<compile_context>
chip_gen: v5e
topology: v5e:2x2
jax: 0.10.0
libtpu: 0.0.40
codegen_flags: <defaults>
</compile_context>

<pallas_src>
import functools

import jax
import jax.numpy as jnp
from jax import lax
from jax.experimental import pallas as pl
from jax.experimental.pallas import tpu as pltpu


def _round_up(x, m):
    return (x + m - 1) // m * m


def _pixel_norm_kernel(x_ref, o_ref, *, eps):
    # x_ref / o_ref: (1, C, TILE) -- full channel extent, one lane tile of
    # flattened spatial positions.  Reduce over channels (sublane axis, XLU),
    # rsqrt on the EUP, broadcast-multiply on the VPU; compute in f32, store
    # in the input dtype.
    x = x_ref[...].astype(jnp.float32)
    ms = jnp.mean(x * x, axis=1, keepdims=True)      # (1, 1, TILE)
    inv = lax.rsqrt(ms + eps)                        # EUP slot, effectively free
    o_ref[...] = (x * inv).astype(o_ref.dtype)


def pixel_norm(x, *, eps=1e-8, lane_tile=2048):
    """PixelNorm over dim=1 of a (B, C, *spatial) tensor (PyTorch semantics)."""
    shape = x.shape
    B, C = int(shape[0]), int(shape[1])
    S = 1
    for d in shape[2:]:
        S *= int(d)

    x3 = x.reshape(B, C, S)

    # Lane axis must be a multiple of 128 (or the full extent); pad the tail
    # once and crop afterwards.  Padded lanes produce zeros and are discarded.
    Sp = _round_up(max(S, 128), 128)
    tile = min(lane_tile, Sp)
    Sp = _round_up(Sp, tile)
    if Sp != S:
        x3 = jnp.pad(x3, ((0, 0), (0, 0), (0, Sp - S)))

    grid = (B, Sp // tile)
    out = pl.pallas_call(
        functools.partial(_pixel_norm_kernel, eps=eps),
        out_shape=jax.ShapeDtypeStruct((B, C, Sp), x.dtype),
        grid_spec=pltpu.PrefetchScalarGridSpec(
            num_scalar_prefetch=0,
            grid=grid,
            in_specs=[pl.BlockSpec((1, C, tile), lambda b, s: (b, 0, s))],
            out_specs=pl.BlockSpec((1, C, tile), lambda b, s: (b, 0, s)),
        ),
        compiler_params=pltpu.CompilerParams(
            dimension_semantics=("parallel", "parallel")),
    )(x3)

    if Sp != S:
        out = out[:, :, :S]
    return out.reshape(shape)


# eps / lane_tile are baked into the kernel trace, so keep them static.
pixel_norm_jit = jax.jit(pixel_norm, static_argnames=("eps", "lane_tile"))


# ---------------------------------- main ----------------------------------- #

if __name__ == "__main__":
    key = jax.random.PRNGKey(0)
    # Small 3D-MRI-style activation: NCDHW, batch=2, channels=8, 16^3 spatial.
    x = jax.random.normal(key, (2, 8, 16, 16, 16), dtype=jnp.float32)

    y = pixel_norm_jit(x)
    jax.block_until_ready(y)

    # Pure-JAX reference (PyTorch semantics: x / sqrt(mean(x^2, dim=1) + 1e-8)).
    ref = x / jnp.sqrt(jnp.mean(x * x, axis=1, keepdims=True) + 1e-8)
    assert y.shape == x.shape, y.shape
    assert bool(jnp.allclose(y, ref, atol=1e-5, rtol=1e-5)), \
        float(jnp.max(jnp.abs(y - ref)))
    print("KERNEL_OK")
</pallas_src>

<mosaic_0001>
module attributes {stable_mosaic.version = 11 : i64} {
  func.func @_pixel_norm_kernel(%arg0: i32, %arg1: i32, %arg2: memref<1x8x2048xf32, #tpu.memory_space<vmem>>, %arg3: memref<1x8x2048xf32, #tpu.memory_space<vmem>>) attributes {dimension_semantics = [#tpu.dimension_semantics<parallel>, #tpu.dimension_semantics<parallel>], iteration_bounds = array<i64: 2, 2>, scalar_prefetch = 0 : i64, scratch_operands = 0 : i64, tpu.core_type = #tpu.core_type<tc>, window_params = [{transform_indices = @transform_0, window_bounds = array<i64: 1, 8, 2048>}, {transform_indices = @transform_1, window_bounds = array<i64: 1, 8, 2048>}]} {
    %c0 = arith.constant 0 : index
    %c0_0 = arith.constant 0 : index
    %c0_1 = arith.constant 0 : index
    %0 = vector.load %arg2[%c0, %c0_0, %c0_1] : memref<1x8x2048xf32, #tpu.memory_space<vmem>>, vector<1x8x2048xf32>
    %1 = arith.mulf %0, %0 : vector<1x8x2048xf32>
    %cst = arith.constant dense<0.000000e+00> : vector<1x2048xf32>
    %2 = vector.multi_reduction <add>, %1, %cst [1] : vector<1x8x2048xf32> to vector<1x2048xf32>
    %3 = vector.shape_cast %2 : vector<1x2048xf32> to vector<1x1x2048xf32>
    %cst_2 = arith.constant 8.000000e+00 : f32
    %4 = vector.broadcast %cst_2 : f32 to vector<1x1x2048xf32>
    %5 = arith.divf %3, %4 : vector<1x1x2048xf32>
    %cst_3 = arith.constant 9.99999993E-9 : f32
    %6 = vector.broadcast %cst_3 : f32 to vector<1x1x2048xf32>
    %7 = arith.addf %5, %6 : vector<1x1x2048xf32>
    %8 = math.rsqrt %7 : vector<1x1x2048xf32>
    %9 = vector.broadcast %8 : vector<1x1x2048xf32> to vector<1x8x2048xf32>
    %10 = arith.mulf %0, %9 : vector<1x8x2048xf32>
    %c0_4 = arith.constant 0 : index
    %c0_5 = arith.constant 0 : index
    %c0_6 = arith.constant 0 : index
    %11 = vector.load %arg3[%c0_4, %c0_5, %c0_6] : memref<1x8x2048xf32, #tpu.memory_space<vmem>>, vector<1x8x2048xf32>
    tpu.vector_store %arg3[%c0_4, %c0_5, %c0_6], %10 {strides = array<i32>} : memref<1x8x2048xf32, #tpu.memory_space<vmem>>, vector<1x8x2048xf32>,
    return
  }
  func.func @transform_0(%arg0: i32, %arg1: i32) -> (i32, i32, i32) {
    %c0_i32 = arith.constant 0 : i32
    %c0_i32_0 = arith.constant 0 : i32
    return %arg0, %c0_i32, %arg1 : i32, i32, i32
  }
  func.func @transform_1(%arg0: i32, %arg1: i32) -> (i32, i32, i32) {
    %c0_i32 = arith.constant 0 : i32
    %c0_i32_0 = arith.constant 0 : i32
    return %arg0, %c0_i32, %arg1 : i32, i32, i32
  }
}

</mosaic_0001>

<bundles_post_ra>
// kernel: pixel_norm.1
= control target key start
LH: loop header
LB: loop body
LE: loop exit
PB: predicated region body
PF: predicated region fallthrough
CT: control target
= control target key end

     0   :  { %s744_s6 = smov 0   ;;  %s746_s7 = smov 0   ;;  %s1190_s0 = inlined_call_operand.vmem [shape: f32[2,8,4096], index: 0, kind: input, shape index: {}]   ;;  %s1191_s1 = inlined_call_operand.vmem [shape: f32[2,8,4096], index: 1, kind: output, shape index: {}]  }
   0x1   :  { %s748_s8 = smov 0   ;;  %s750_s9 = smov 0  }
   0x2   :  { %s752_s10 = smov 0  }
   0x3 LB: > { %s20_s11 = sadd.s32 1, %s723_s8  ;;  %s23_s12 = sadd.s32 1, %s727_s9  ;;  %s731_s10 = sphi %s752_s10, %s11_s10   ;;  %s727_s9 = sphi %s750_s9, %s1219_s9   ;;  %s723_s8 = sphi %s748_s8, %s1218_s8   ;;  %s719_s7 = sphi %s746_s7, %s1217_s7   ;;  %s715_s6 = sphi %s744_s6, %s1216_s6  }
   0x4   : > { %p21_p0 = scmp.ge.s32.totalorder %s20_s11, 2  ;;  %p609_p1 = scmp.ge.s32.totalorder %s731_s10, 1 }
   0x5   : > { %p108_p2 = scmp.lt.s32.totalorder %s731_s10, 5 }
   0x6   : > { %s1221_s11 = smov (%p21_p0, %s20_s11), 0  ;;  %s1223_s12 = smov (!%p21_p0, %s23_s12), %s727_s9 }
   0x7   : > { %p109_p3 = pnand %p609_p1, %p108_p2  ;;  %p25_p4 = scmp.ge.s32.totalorder %s1223_s12, 2 }
   0x8   : > { %s610_s13 = sshll.u32 (!%p109_p3), %s715_s6, 4  ;;  %p137_p5 = scmp.lt.s32.totalorder (!%p109_p3), %s719_s7, 1 }
   0x9   : > { %s1225_s12 = smov (%p25_p4, %s1223_s12), 0  ;;  %112 = sbr.rel (%p109_p3) target bundleno = 115 (0x73), region = 24 }
   0xa   : > { %p139_p6 = scmp.lt.s32.totalorder (!%p109_p3), %s610_s13, 31 }
   0xe   : > { %v733_v0 = vmov 8.0   ;;  %s1227_s7 = smov (!%p137_p5, %s719_s7), 1  ;;  %s1229_s13 = smov (!%p139_p6, %s610_s13), 31 }
   0xf   : > { %659 = vrcp.f32 %v733_v0  ;;  %s611_s14 = sshll.u32 %s1227_s7, 5 }
  0x10   : > { %s774_s15 = sadd.s32 %s611_s14, %s1229_s13 }
  0x11   : > { %s612_s16 = sshll.u32 %s774_s15, 3 }
  0x12   : > { %s782_s19 = scalar_lea.vmem %s1190_s0, %s612_s16  ;;  %s980_s22 = scalar_lea.vmem %s1191_s1, %s612_s16 }
  0x13   : > { %v785_v2 = vld [vmem:[%s782_s19] sm:$0xff]  ;;  %v788_v4 = vld [vmem:[%s782_s19 + $0x8] sm:$0xff]  ;;  %v791_v5 = vld [vmem:[%s782_s19 + $0x10] sm:$0xff] }
  0x14   : > { %v172_v6 = vmul.f32 %v785_v2, %v785_v2  ;;  %v173_v7 = vmul.f32 %v788_v4, %v788_v4  ;;  %v174_v8 = vmul.f32 %v791_v5, %v791_v5  ;;  %v800_v9 = vld [vmem:[%s782_s19 + $0x18] sm:$0xff]  ;;  %v803_v10 = vld [vmem:[%s782_s19 + $0x20] sm:$0xff]  ;;  %v806_v11 = vld [vmem:[%s782_s19 + $0x28] sm:$0xff] }
  0x15   : > { %v660_v1 = vpop.eup %659  ;;  %v175_v13 = vmul.f32 %v800_v9, %v800_v9  ;;  %v176_v14 = vmul.f32 %v803_v10, %v803_v10  ;;  %v177_v15 = vmul.f32 %v806_v11, %v806_v11  ;;  %v815_v16 = vld [vmem:[%s782_s19 + $0x30] sm:$0xff]  ;;  %v820_v37 = vld [vmem:[%s782_s19 + $0x38] sm:$0xff] }
  0x16   : > { %v285_v3 = vmul.f32 8.0, %v660_v1  ;;  %vm289_vm0 = vweird.f32 %v660_v1  ;;  %v188_v17 = vrot.slane %v172_v6, 4  ;;  %v194_v18 = vrot.slane %v173_v7, 4 }
  0x17   : > { %v200_v19 = vrot.slane %v174_v8, 4  ;;  %v178_v20 = vmul.f32 %v815_v16, %v815_v16  ;;  %v206_v22 = vrot.slane %v175_v13, 4  ;;  %v212_v23 = vrot.slane %v176_v14, 4 }
  0x18   : > { %v286_v12 = vsub.f32 1.0, %v285_v3  ;;  %v218_v24 = vrot.slane %v177_v15, 4  ;;  %v189_v25 = vadd.f32 %v188_v17, %v172_v6  ;;  %v195_v26 = vadd.f32 %v194_v18, %v173_v7 }
  0x19   : > { %v201_v27 = vadd.f32 %v200_v19, %v174_v8  ;;  %v224_v28 = vrot.slane %v178_v20, 4  ;;  %v207_v30 = vadd.f32 %v206_v22, %v175_v13  ;;  %v213_v31 = vadd.f32 %v212_v23, %v176_v14  ;;  %v843_v23 = vld [vmem:[%s782_s19 + $0x40] sm:$0xff] }
  0x1a   : > { %v287_v21 = vmul.f32 %v660_v1, %v286_v12  ;;  %v219_v32 = vadd.f32 %v218_v24, %v177_v15  ;;  %v190_v33 = vrot.slane %v189_v25, 2  ;;  %v196_v34 = vrot.slane %v195_v26, 2 }
  0x1b   : > { %v202_v35 = vrot.slane %v201_v27, 2  ;;  %v225_v36 = vadd.f32 %v224_v28, %v178_v20  ;;  %v208_v39 = vrot.slane %v207_v30, 2  ;;  %v214_v40 = vrot.slane %v213_v31, 2 }
  0x1c   : > { %v288_v29 = vadd.f32 %v660_v1, %v287_v21  ;;  %v220_v41 = vrot.slane %v219_v32, 2  ;;  %v191_v42 = vadd.f32 %v190_v33, %v189_v25  ;;  %v197_v43 = vadd.f32 %v196_v34, %v195_v26  ;;  %v849_v25 = vld [vmem:[%s782_s19 + $0x48] sm:$0xff]  ;;  %v852_v26 = vld [vmem:[%s782_s19 + $0x50] sm:$0xff] }
  0x1d   : > { %v203_v44 = vadd.f32 %v202_v35, %v201_v27  ;;  %v226_v45 = vrot.slane %v225_v36, 2  ;;  %v209_v46 = vadd.f32 %v208_v39, %v207_v30  ;;  %v215_v47 = vadd.f32 %v214_v40, %v213_v31  ;;  %v855_v27 = vld [vmem:[%s782_s19 + $0x58] sm:$0xff]  ;;  %v876_v35 = vld [vmem:[%s782_s19 + $0x60] sm:$0xff] }
  0x1e   : > { %v823_v38 = vsel %vm289_vm0, %v660_v1, %v288_v29  ;;  %v221_v48 = vadd.f32 %v220_v41, %v219_v32  ;;  %v179_v49 = vmul.f32 %v820_v37, %v820_v37  ;;  %v192_v50 = vrot.slane %v191_v42, 1 }
  0x1f   : > { %v198_v51 = vrot.slane %v197_v43, 1  ;;  %v204_v52 = vrot.slane %v203_v44, 1  ;;  %v227_v53 = vadd.f32 %v226_v45, %v225_v36  ;;  %v210_v54 = vrot.slane %v209_v46, 1 }
  0x20   : > { %v216_v55 = vrot.slane %v215_v47, 1  ;;  %v222_v56 = vrot.slane %v221_v48, 1  ;;  %v230_v57 = vrot.slane %v179_v49, 4  ;;  %v193_v58 = vadd.f32 %v192_v50, %v191_v42 }
  0x21   : > { %v199_v59 = vadd.f32 %v198_v51, %v197_v43  ;;  %v205_v60 = vadd.f32 %v204_v52, %v203_v44  ;;  %v228_v61 = vrot.slane %v227_v53, 1  ;;  %v211_v62 = vadd.f32 %v210_v54, %v209_v46 }
  0x22   : > { %v217_v63 = vadd.f32 %v216_v55, %v215_v47  ;;  %v223_v0 = vadd.f32 %v222_v56, %v221_v48  ;;  %v231_v1 = vadd.f32 %v230_v57, %v179_v49  ;;  %v291_v3 = vmul.f32 %v823_v38, %v193_v58 }
  0x23   : > { %v292_v6 = vmul.f32 %v823_v38, %v199_v59  ;;  %v293_v7 = vmul.f32 %v823_v38, %v205_v60  ;;  %v229_v8 = vadd.f32 %v228_v61, %v227_v53  ;;  %v294_v12 = vmul.f32 %v823_v38, %v211_v62 }
  0x24   : > { %v295_v13 = vmul.f32 %v823_v38, %v217_v63  ;;  %v296_v14 = vmul.f32 %v823_v38, %v223_v0  ;;  %v232_v15 = vrot.slane %v231_v1, 2  ;;  %v833_v17 = vadd.f32 1e-08, %v291_v3 }
  0x25   : > { %v835_v18 = vadd.f32 1e-08, %v292_v6  ;;  %v837_v19 = vadd.f32 1e-08, %v293_v7  ;;  %v297_v20 = vmul.f32 %v823_v38, %v229_v8  ;;  %v840_v21 = vadd.f32 1e-08, %v294_v12 }
  0x26   : > { %v233_v22 = vadd.f32 %v232_v15, %v231_v1  ;;  %661 = vrsqrt.f32 %v833_v17  ;;  %v846_v24 = vadd.f32 1e-08, %v295_v13  ;;  %v858_v28 = vadd.f32 1e-08, %v296_v14 }
  0x27   : > { %663 = vrsqrt.f32 %v835_v18  ;;  %v861_v29 = vadd.f32 1e-08, %v297_v20  ;;  %v180_v31 = vmul.f32 %v843_v23, %v843_v23  ;;  %vm329_vm1 = vweird.f32 %v833_v17 }
  0x28   : > { %665 = vrsqrt.f32 %v837_v19  ;;  %v234_v30 = vrot.slane %v233_v22, 1  ;;  %v181_v32 = vmul.f32 %v849_v25, %v849_v25  ;;  %v182_v33 = vmul.f32 %v852_v26, %v852_v26 }
  0x29   : > { %667 = vrsqrt.f32 %v840_v21  ;;  %v873_v34 = vmul.f32 %v855_v27, %v855_v27  ;;  %vm339_vm2 = vweird.f32 %v835_v18  ;;  %v236_v39 = vrot.slane %v180_v31, 4 }
  0x2a   : > { %669 = vrsqrt.f32 %v846_v24  ;;  %v235_v36 = vadd.f32 %v234_v30, %v233_v22  ;;  %vm349_vm3 = vweird.f32 %v837_v19  ;;  %v242_v40 = vrot.slane %v181_v32, 4 }
  0x2b   : > { %671 = vrsqrt.f32 %v858_v28  ;;  %v248_v41 = vrot.slane %v182_v33, 4  ;;  %v254_v42 = vrot.slane %v873_v34, 4  ;;  %vm359_vm4 = vweird.f32 %v840_v21 }
  0x2c   : > { %v883_v43 = vpop.eup %661  ;;  %673 = vrsqrt.f32 %v861_v29  ;;  %v298_v44 = vmul.f32 %v823_v38, %v235_v36  ;;  %v888_v45 = vadd.f32 %v236_v39, %v180_v31  ;;  %v892_v46 = vmul.f32 %v876_v35, %v876_v35 }
  0x2d   : > { %v894_v47 = vpop.eup %663  ;;  %v324_v48 = vmul.f32 %v883_v43, %v833_v17  ;;  %vm330_vm5 = vweird.f32 %v883_v43  ;;  %vm369_vm6 = vweird.f32 %v846_v24  ;;  %v900_v49 = vadd.f32 %v242_v40, %v181_v32 }
  0x2e   : > { %v902_v50 = vadd.f32 %v248_v41, %v182_v33  ;;  %v904_v51 = vpop.eup %665  ;;  %v334_v52 = vmul.f32 %v894_v47, %v835_v18  ;;  %vm340_vm7 = vweird.f32 %v894_v47  ;;  %vm379_vm8 = vweird.f32 %v858_v28  ;;  %vm947_vm14 = vmor %vm329_vm1, %vm330_vm5 }
  0x2f   : > { %v910_v53 = vadd.f32 1e-08, %v298_v44  ;;  %v238_v54 = vrot.slane %v888_v45, 2  ;;  %v913_v55 = vpop.eup %667  ;;  %v325_v56 = vmul.f32 %v883_v43, %v324_v48  ;;  %v344_v57 = vmul.f32 %v904_v51, %v837_v19  ;;  %vm958_vm0 = vmor %vm339_vm2, %vm340_vm7 }
  0x30   : > { %vm350_vm9 = vweird.f32 %v904_v51  ;;  %vm389_vm10 = vweird.f32 %v861_v29  ;;  %v244_v58 = vrot.slane %v900_v49, 2  ;;  %v921_v59 = vpop.eup %669  ;;  %v335_v60 = vmul.f32 %v894_v47, %v334_v52 }
  0x31   : > { %v354_v61 = vmul.f32 %v913_v55, %v840_v21  ;;  %vm360_vm11 = vweird.f32 %v913_v55  ;;  %675 = vrsqrt.f32 %v910_v53  ;;  %v928_v62 = vpop.eup %671  ;;  %v326_v63 = vmul.f32 0.5, %v325_v56  ;;  %vm970_vm1 = vmor %vm349_vm3, %vm350_vm9 }
  0x32   : > { %v345_v0 = vmul.f32 %v904_v51, %v344_v57  ;;  %v364_v1 = vmul.f32 %v921_v59, %v846_v24  ;;  %vm370_vm12 = vweird.f32 %v921_v59  ;;  %v934_v3 = vpop.eup %673  ;;  %v336_v6 = vmul.f32 0.5, %v335_v60  ;;  %vm990_vm3 = vmor %vm359_vm4, %vm360_vm11 }
  0x33   : > { %v355_v7 = vmul.f32 %v913_v55, %v354_v61  ;;  %v374_v8 = vmul.f32 %v928_v62, %v858_v28  ;;  %vm380_vm13 = vweird.f32 %v928_v62  ;;  %v327_v12 = vsub.f32 1.5, %v326_v63  ;;  %vm1003_vm5 = vmor %vm369_vm6, %vm370_vm12 }
  0x34   : > { %v346_v13 = vmul.f32 0.5, %v345_v0  ;;  %v365_v14 = vmul.f32 %v921_v59, %v364_v1  ;;  %v384_v15 = vmul.f32 %v934_v3, %v861_v29  ;;  %v337_v22 = vsub.f32 1.5, %v336_v6  ;;  %vm1016_vm4 = vmor %vm379_vm8, %vm380_vm13 }
  0x35   : > { %v356_v30 = vmul.f32 0.5, %v355_v7  ;;  %v375_v31 = vmul.f32 %v928_v62, %v374_v8  ;;  %vm390_vm15 = vweird.f32 %v934_v3  ;;  %v328_v32 = vmul.f32 %v883_v43, %v327_v12 }
  0x36   : > { %v347_v17 = vsub.f32 1.5, %v346_v13  ;;  %v366_v36 = vmul.f32 0.5, %v365_v14  ;;  %v385_v39 = vmul.f32 %v934_v3, %v384_v15  ;;  %v338_v41 = vmul.f32 %v894_v47, %v337_v22  ;;  %vm1030_vm6 = vmor %vm389_vm10, %vm390_vm15  ;;  %v1053_v15 = vld [vmem:[%s782_s19 + $0x68] sm:$0xff]  ;;  %v1065_v22 = vld [vmem:[%s782_s19 + $0x70] sm:$0xff] }
  0x37   : > { %v963_v40 = vpop.eup %675  ;;  %v357_v18 = vsub.f32 1.5, %v356_v30  ;;  %v376_v48 = vmul.f32 0.5, %v375_v31  ;;  %vm399_vm2 = vweird.f32 %v910_v53  ;;  %v332_v52 = vsel %vm947_vm14, %v883_v43, %v328_v32 }
  0x38   : > { %v348_v19 = vmul.f32 %v904_v51, %v347_v17  ;;  %v367_v57 = vsub.f32 1.5, %v366_v36  ;;  %v386_v60 = vmul.f32 0.5, %v385_v39  ;;  %v483_v61 = vmul.f32 %v332_v52, %v785_v2 }
  0x39   : > { %v342_v63 = vsel %vm958_vm0, %v894_v47, %v338_v41  ;;  %v358_v43 = vmul.f32 %v913_v55, %v357_v18  ;;  %v377_v0 = vsub.f32 1.5, %v376_v48  ;;  %v394_v8 = vmul.f32 %v963_v40, %v910_v53 }
  0x3a   : > { %v484_v1 = vmul.f32 %v342_v63, %v788_v4  ;;  %v352_v2 = vsel %vm970_vm1, %v904_v51, %v348_v19  ;;  %v368_v47 = vmul.f32 %v921_v59, %v367_v57  ;;  %v387_v6 = vsub.f32 1.5, %v386_v60  ;;  %499 = vst [vmem:[%s980_s22] sm:$0xff] %v483_v61 }
  0x3b   : > { %v485_v4 = vmul.f32 %v352_v2, %v791_v5  ;;  %v362_v51 = vsel %vm990_vm3, %v913_v55, %v358_v43  ;;  %v378_v7 = vmul.f32 %v928_v62, %v377_v0  ;;  %vm400_vm7 = vweird.f32 %v963_v40 }
  0x3c   : > { %500 = vst [vmem:[%s980_s22 + $0x8] sm:$0xff] %v484_v1  ;;  %v486_v5 = vmul.f32 %v362_v51, %v800_v9  ;;  %v372_v55 = vsel %vm1003_vm5, %v921_v59, %v368_v47  ;;  %v388_v12 = vmul.f32 %v934_v3, %v387_v6  ;;  %v395_v14 = vmul.f32 %v963_v40, %v394_v8  ;;  %vm1084_vm8 = vmor %vm399_vm2, %vm400_vm7  ;;  %v1098_v1 = vld [vmem:[%s782_s19 + $0x78] sm:$0xff] }
  0x3d   : > { %501 = vst [vmem:[%s980_s22 + $0x10] sm:$0xff] %v485_v4  ;;  %v487_v29 = vmul.f32 %v372_v55, %v803_v10  ;;  %v382_v13 = vsel %vm1016_vm4, %v928_v62, %v378_v7  ;;  %v239_v9 = vadd.f32 %v238_v54, %v888_v45  ;;  %v245_v62 = vadd.f32 %v244_v58, %v900_v49 }
  0x3e   : > { %502 = vst [vmem:[%s980_s22 + $0x18] sm:$0xff] %v486_v5  ;;  %v488_v59 = vmul.f32 %v382_v13, %v806_v11  ;;  %v392_v10 = vsel %vm1030_vm6, %v934_v3, %v388_v12  ;;  %v250_v20 = vrot.slane %v902_v50, 2  ;;  %v396_v54 = vmul.f32 0.5, %v395_v14 }
  0x3f   : > { %503 = vst [vmem:[%s980_s22 + $0x20] sm:$0xff] %v487_v29  ;;  %v489_v45 = vmul.f32 %v392_v10, %v815_v16  ;;  %v240_v30 = vrot.slane %v239_v9, 1  ;;  %v255_v11 = vadd.f32 %v254_v42, %v873_v34  ;;  %v246_v31 = vrot.slane %v245_v62, 1 }
  0x40   : > { %504 = vst [vmem:[%s980_s22 + $0x28] sm:$0xff] %v488_v59  ;;  %v251_v3 = vadd.f32 %v250_v20, %v902_v50  ;;  %v260_v32 = vrot.slane %v892_v46, 4  ;;  %v185_v49 = vmul.f32 %v1053_v15, %v1053_v15  ;;  %v397_v58 = vsub.f32 1.5, %v396_v54 }
  0x41   : > { %505 = vst [vmem:[%s980_s22 + $0x30] sm:$0xff] %v489_v45  ;;  %v241_v33 = vadd.f32 %v240_v30, %v239_v9  ;;  %v256_v17 = vrot.slane %v255_v11, 2  ;;  %v186_v16 = vmul.f32 %v1065_v22, %v1065_v22  ;;  %v247_v42 = vadd.f32 %v246_v31, %v245_v62 }
  0x42   : > { %v252_v50 = vrot.slane %v251_v3, 1  ;;  %v261_v36 = vadd.f32 %v260_v32, %v892_v46  ;;  %v266_v39 = vrot.slane %v185_v49, 4  ;;  %v398_v41 = vmul.f32 %v963_v40, %v397_v58 }
  0x43   : > { %v299_v44 = vmul.f32 %v823_v38, %v241_v33  ;;  %v257_v18 = vadd.f32 %v256_v17, %v255_v11  ;;  %v272_v48 = vrot.slane %v186_v16, 4  ;;  %v300_v52 = vmul.f32 %v823_v38, %v247_v42 }
  0x44   : > { %v253_v53 = vadd.f32 %v252_v50, %v251_v3  ;;  %v262_v19 = vrot.slane %v261_v36, 2  ;;  %v267_v56 = vadd.f32 %v266_v39, %v185_v49  ;;  %v402_v57 = vsel %vm1084_vm8, %v963_v40, %v398_v41 }
  0x45   : > { %v315_v60 = vadd.f32 1e-08, %v299_v44  ;;  %v258_v46 = vrot.slane %v257_v18, 1  ;;  %v273_v61 = vadd.f32 %v272_v48, %v186_v16  ;;  %v490_v63 = vmul.f32 %v402_v57, %v820_v37 }
  0x46   : > { %v316_v43 = vadd.f32 1e-08, %v300_v52  ;;  %v301_v21 = vmul.f32 %v823_v38, %v253_v53  ;;  %v263_v0 = vadd.f32 %v262_v19, %v261_v36  ;;  %v268_v47 = vrot.slane %v267_v56, 2 }
  0x47   : > { %677 = vrsqrt.f32 %v315_v60  ;;  %v259_v2 = vadd.f32 %v258_v46, %v257_v18  ;;  %506 = vst [vmem:[%s980_s22 + $0x38] sm:$0xff] %v490_v63  ;;  %v274_v51 = vrot.slane %v273_v61, 2  ;;  %v187_v37 = vmul.f32 %v1098_v1, %v1098_v1 }
  0x48   : > { %679 = vrsqrt.f32 %v316_v43  ;;  %v317_v24 = vadd.f32 1e-08, %v301_v21  ;;  %v264_v6 = vrot.slane %v263_v0, 1  ;;  %v269_v4 = vadd.f32 %v268_v47, %v267_v56 }
  0x49   : > { %v302_v40 = vmul.f32 %v823_v38, %v259_v2  ;;  %v275_v5 = vadd.f32 %v274_v51, %v273_v61  ;;  %v278_v55 = vrot.slane %v187_v37, 4  ;;  %vm409_vm9 = vweird.f32 %v315_v60 }
  0x4a   : > { %681 = vrsqrt.f32 %v317_v24  ;;  %v265_v7 = vadd.f32 %v264_v6, %v263_v0  ;;  %v270_v8 = vrot.slane %v269_v4, 1  ;;  %vm419_vm10 = vweird.f32 %v316_v43 }
  0x4b   : > { %v1104_v28 = vadd.f32 1e-08, %v302_v40  ;;  %v276_v14 = vrot.slane %v275_v5, 1  ;;  %v279_v62 = vadd.f32 %v278_v55, %v187_v37  ;;  %vm429_vm13 = vweird.f32 %v317_v24 }
  0x4c   : > { %v303_v12 = vmul.f32 %v823_v38, %v265_v7  ;;  %v271_v13 = vadd.f32 %v270_v8, %v269_v4 }
  0x4d   : > { %v678_v29 = vpop.eup %677  ;;  %683 = vrsqrt.f32 %v1104_v28  ;;  %v277_v54 = vadd.f32 %v276_v14, %v275_v5  ;;  %v280_v31 = vrot.slane %v279_v62, 2  ;;  %vm439_vm1 = vweird.f32 %v1104_v28 }
  0x4e   : > { %v680_v9 = vpop.eup %679  ;;  %v404_v59 = vmul.f32 %v678_v29, %v315_v60  ;;  %v1108_v10 = vadd.f32 1e-08, %v303_v12  ;;  %v304_v45 = vmul.f32 %v823_v38, %v271_v13  ;;  %vm410_vm11 = vweird.f32 %v678_v29 }
  0x4f   : > { %v414_v20 = vmul.f32 %v680_v9, %v316_v43  ;;  %v305_v33 = vmul.f32 %v823_v38, %v277_v54  ;;  %v281_v17 = vadd.f32 %v280_v31, %v279_v62  ;;  %vm420_vm12 = vweird.f32 %v680_v9  ;;  %vm1120_vm14 = vmor %vm409_vm9, %vm410_vm11 }
  0x50   : > { %v682_v30 = vpop.eup %681  ;;  %v405_v11 = vmul.f32 %v678_v29, %v404_v59  ;;  %685 = vrsqrt.f32 %v1108_v10  ;;  %v1112_v49 = vadd.f32 1e-08, %v304_v45  ;;  %vm1125_vm0 = vmor %vm419_vm10, %vm420_vm12  ;;  %vm449_vm5 = vweird.f32 %v1108_v10 }
  0x51   : > { %v415_v3 = vmul.f32 %v680_v9, %v414_v20  ;;  %v424_v32 = vmul.f32 %v682_v30, %v317_v24  ;;  %v1117_v39 = vadd.f32 1e-08, %v305_v33  ;;  %vm430_vm15 = vweird.f32 %v682_v30 }
  0x52   : > { %v406_v58 = vmul.f32 0.5, %v405_v11  ;;  %687 = vrsqrt.f32 %v1112_v49  ;;  %v282_v48 = vrot.slane %v281_v17, 1  ;;  %vm1135_vm2 = vmor %vm429_vm13, %vm430_vm15  ;;  %vm459_vm8 = vweird.f32 %v1112_v49 }
  0x53   : > { %v684_v16 = vpop.eup %683  ;;  %v416_v34 = vmul.f32 0.5, %v415_v3  ;;  %v425_v42 = vmul.f32 %v682_v30, %v424_v32  ;;  %689 = vrsqrt.f32 %v1117_v39  ;;  %vm469_vm11 = vweird.f32 %v1117_v39 }
  0x54   : > { %v407_v50 = vsub.f32 1.5, %v406_v58  ;;  %v434_v36 = vmul.f32 %v684_v16, %v1104_v28  ;;  %vm440_vm3 = vweird.f32 %v684_v16  ;;  %v283_v21 = vadd.f32 %v282_v48, %v281_v17 }
  0x55   : > { %v417_v44 = vsub.f32 1.5, %v416_v34  ;;  %v426_v18 = vmul.f32 0.5, %v425_v42  ;;  %vm1150_vm4 = vmor %vm439_vm1, %vm440_vm3 }
  0x56   : > { %v686_v52 = vpop.eup %685  ;;  %v408_v53 = vmul.f32 %v678_v29, %v407_v50  ;;  %v435_v56 = vmul.f32 %v684_v16, %v434_v36 }
  0x57   : > { %v418_v57 = vmul.f32 %v680_v9, %v417_v44  ;;  %v427_v60 = vsub.f32 1.5, %v426_v18  ;;  %v444_v46 = vmul.f32 %v686_v52, %v1108_v10  ;;  %vm450_vm6 = vweird.f32 %v686_v52 }
  0x58   : > { %v412_v61 = vsel %vm1120_vm14, %v678_v29, %v408_v53  ;;  %v436_v43 = vmul.f32 0.5, %v435_v56  ;;  %v688_v0 = vpop.eup %687  ;;  %vm451_vm7 = vmor %vm449_vm5, %vm450_vm6 }
  0x59   : > { %v491_v2 = vmul.f32 %v412_v61, %v843_v23  ;;  %v422_v47 = vsel %vm1125_vm0, %v680_v9, %v418_v57  ;;  %v428_v6 = vmul.f32 %v682_v30, %v427_v60  ;;  %v445_v40 = vmul.f32 %v686_v52, %v444_v46  ;;  %v690_v8 = vpop.eup %689 }
  0x5a   : > { %v492_v4 = vmul.f32 %v422_v47, %v849_v25  ;;  %v437_v51 = vsub.f32 1.5, %v436_v43  ;;  %v454_v24 = vmul.f32 %v688_v0, %v1112_v49  ;;  %v306_v25 = vmul.f32 %v823_v38, %v283_v21 }
  0x5b   : > { %507 = vst [vmem:[%s980_s22 + $0x40] sm:$0xff] %v491_v2  ;;  %v432_v37 = vsel %vm1135_vm2, %v682_v30, %v428_v6  ;;  %v446_v7 = vmul.f32 0.5, %v445_v40  ;;  %v464_v13 = vmul.f32 %v690_v8, %v1117_v39  ;;  %vm460_vm9 = vweird.f32 %v688_v0 }
  0x5c   : > { %508 = vst [vmem:[%s980_s22 + $0x48] sm:$0xff] %v492_v4  ;;  %v493_v5 = vmul.f32 %v432_v37, %v852_v26  ;;  %v438_v55 = vmul.f32 %v684_v16, %v437_v51  ;;  %v455_v12 = vmul.f32 %v688_v0, %v454_v24  ;;  %v322_v14 = vadd.f32 1e-08, %v306_v25  ;;  %vm461_vm10 = vmor %vm459_vm8, %vm460_vm9 }
  0x5d   : > { %v447_v29 = vsub.f32 1.5, %v446_v7  ;;  %v465_v59 = vmul.f32 %v690_v8, %v464_v13  ;;  %vm470_vm12 = vweird.f32 %v690_v8 }
  0x5e   : > { %509 = vst [vmem:[%s980_s22 + $0x50] sm:$0xff] %v493_v5  ;;  %v442_v28 = vsel %vm1150_vm4, %v684_v16, %v438_v55  ;;  %v456_v9 = vmul.f32 0.5, %v455_v12  ;;  %691 = vrsqrt.f32 %v322_v14  ;;  %vm471_vm13 = vmor %vm469_vm11, %vm470_vm12  ;;  %vm479_vm14 = vweird.f32 %v322_v14 }
  0x5f   : > { %v494_v38 = vmul.f32 %v442_v28, %v855_v27  ;;  %v448_v26 = vmul.f32 %v686_v52, %v447_v29  ;;  %v466_v45 = vmul.f32 0.5, %v465_v59 }
  0x60   : > { %v457_v62 = vsub.f32 1.5, %v456_v9 }
  0x61   : > { %510 = vst [vmem:[%s980_s22 + $0x58] sm:$0xff] %v494_v38  ;;  %v452_v20 = vsel %vm451_vm7, %v686_v52, %v448_v26  ;;  %v467_v30 = vsub.f32 1.5, %v466_v45 }
  0x62   : > { %v495_v10 = vmul.f32 %v452_v20, %v876_v35  ;;  %v458_v54 = vmul.f32 %v688_v0, %v457_v62 }
  0x63   : > { %v468_v3 = vmul.f32 %v690_v8, %v467_v30 }
  0x64   : > { %511 = vst [vmem:[%s980_s22 + $0x60] sm:$0xff] %v495_v10  ;;  %v462_v11 = vsel %vm461_vm10, %v688_v0, %v458_v54  ;;  %v692_v27 = vpop.eup %691 }
  0x65   : > { %v496_v31 = vmul.f32 %v462_v11, %v1053_v15  ;;  %v474_v32 = vmul.f32 %v692_v27, %v322_v14  ;;  %v472_v49 = vsel %vm471_vm13, %v690_v8, %v468_v3  ;;  %vm480_vm15 = vweird.f32 %v692_v27 }
  0x66   : > { %v497_v58 = vmul.f32 %v472_v49, %v1065_v22  ;;  %vm481_vm0 = vmor %vm479_vm14, %vm480_vm15 }
  0x67   : > { %512 = vst [vmem:[%s980_s22 + $0x68] sm:$0xff] %v496_v31  ;;  %v475_v33 = vmul.f32 %v692_v27, %v474_v32 }
  0x68   : > { %513 = vst [vmem:[%s980_s22 + $0x70] sm:$0xff] %v497_v58 }
  0x69   : > { %v476_v17 = vmul.f32 0.5, %v475_v33 }
  0x6b   : > { %v477_v35 = vsub.f32 1.5, %v476_v17 }
  0x6d   : > { %v478_v16 = vmul.f32 %v692_v27, %v477_v35 }
  0x6f   : > { %v482_v34 = vsel %vm481_vm0, %v692_v27, %v478_v16 }
  0x70   : > { %v498_v42 = vmul.f32 %v482_v34, %v1098_v1 }
  0x72   : > { %514 = vst [vmem:[%s980_s22 + $0x78] sm:$0xff] %v498_v42 }
  0x73 PF: > { %s11_s10 = sadd.s32 1, %s731_s10   ;;  %s1216_s6 = smov %s723_s8 }
  0x74   : > { %p8_p7 = scmp.ge.s32.totalorder %s11_s10, 6   ;;  %s1217_s7 = smov %s727_s9 }
  0x75   : > { %s1218_s8 = smov %s1221_s11  ;;  %s1219_s9 = smov %s1225_s12 }
  0x76   :  { %10 = sbr.rel (!%p8_p7) target bundleno = 3 (0x3), region = 54 }

</bundles_post_ra>
